<compile_context>
chip_gen: v7x
topology: tpu7x:2x2x1
jax: 0.10.0
libtpu: 0.0.40
codegen_flags: <defaults>
</compile_context>

<pallas_src>
import functools

import jax
import jax.numpy as jnp
from jax.experimental import pallas as pl
from jax.experimental.pallas import tpu as pltpu

BN_EPS = 1e-5
LANE = 128


def _bn_relu(h, bn, ones_row, inv_b):
    """Single-pass training-mode BatchNorm + ReLU.

    h:   [B, F] f32 activations
    bn:  [2, F] f32 -> row 0 = gamma, row 1 = beta
    """
    # Column sums of h and h*h via tiny matmuls (MXU slot, one traversal of h).
    s = jnp.dot(ones_row, h, preferred_element_type=jnp.float32)        # [1, F]
    sq = jnp.dot(ones_row, h * h, preferred_element_type=jnp.float32)   # [1, F]
    mean = s * inv_b
    var = jnp.maximum(sq * inv_b - mean * mean, 0.0)                    # biased var
    gamma = bn[0:1, :]
    beta = bn[1:2, :]
    hn = (h - mean) * jax.lax.rsqrt(var + BN_EPS) * gamma + beta
    return jnp.maximum(hn, 0.0)


def _fcn_kernel(x_ref, w1_ref, bn1_ref, w2_ref, bn2_ref, w3_ref, b3_ref, out_ref):
    """Whole forward pass in one kernel (shapes are tiny, no tiling needed)."""
    x = x_ref[...].astype(jnp.float32)
    b = x.shape[0]
    inv_b = jnp.float32(1.0 / b)
    ones_row = jnp.ones((1, b), jnp.float32)

    # ---- fc1: Linear(client_num -> 256), bias cancelled by BN1 ----
    h = jnp.dot(x, w1_ref[...], preferred_element_type=jnp.float32)
    h = _bn_relu(h, bn1_ref[...], ones_row, inv_b)

    # ---- fc2: Linear(256 -> 64), bias cancelled by BN2 ----
    h = jnp.dot(h, w2_ref[...], preferred_element_type=jnp.float32)
    h = _bn_relu(h, bn2_ref[...], ones_row, inv_b)

    # ---- output: Linear(64 -> client_num + 1), lane-padded to 128 cols ----
    out = jnp.dot(h, w3_ref[...], preferred_element_type=jnp.float32) + b3_ref[...]
    out_ref[...] = out.astype(out_ref.dtype)


def pack_params(params):
    """Pack raw module params into the 6 arrays the kernel consumes."""
    out_dim = params["w3"].shape[1]
    out_pad = ((out_dim + LANE - 1) // LANE) * LANE
    pad = out_pad - out_dim
    packed = {
        "w1": params["w1"],                                               # [in, 256]
        "bn1": jnp.concatenate([params["g1"], params["be1"]], axis=0),    # [2, 256]
        "w2": params["w2"],                                               # [256, 64]
        "bn2": jnp.concatenate([params["g2"], params["be2"]], axis=0),    # [2, 64]
        "w3": jnp.pad(params["w3"], ((0, 0), (0, pad))),                  # [64, 128]
        "b3": jnp.pad(params["b3"], ((0, 0), (0, pad))),                  # [1, 128]
    }
    return packed, out_dim


@functools.partial(jax.jit, static_argnames=("out_dim",))
def fcn_forward(x, packed, out_dim):
    """x: [B, client_num] f32.  packed: output of pack_params."""
    b = x.shape[0]
    out_pad = packed["b3"].shape[1]
    vmem = pl.BlockSpec(memory_space=pltpu.MemorySpace.VMEM)
    operands = (
        x,
        packed["w1"], packed["bn1"],
        packed["w2"], packed["bn2"],
        packed["w3"], packed["b3"],
    )
    out = pl.pallas_call(
        _fcn_kernel,
        out_shape=jax.ShapeDtypeStruct((b, out_pad), jnp.float32),
        in_specs=[vmem] * len(operands),
        out_specs=vmem,
    )(*operands)
    return out[:, :out_dim]


def init_params(key, client_num):
    """Deterministic synthetic parameters matching the PyTorch module shapes."""
    ks = jax.random.split(key, 6)

    def lin(kw, kb, fan_in, fan_out):
        bound = 1.0 / jnp.sqrt(fan_in)
        # stored transposed: [in, out]
        w = jax.random.uniform(kw, (fan_in, fan_out), jnp.float32, -bound, bound)
        bvec = jax.random.uniform(kb, (1, fan_out), jnp.float32, -bound, bound)
        return w, bvec

    w1, b1 = lin(ks[0], ks[1], client_num, 256)
    w2, b2 = lin(ks[2], ks[3], 256, 64)
    w3, b3 = lin(ks[4], ks[5], 64, client_num + 1)

    return {
        "w1": w1, "b1": b1,
        "g1": jnp.ones((1, 256), jnp.float32), "be1": jnp.zeros((1, 256), jnp.float32),
        "w2": w2, "b2": b2,
        "g2": jnp.ones((1, 64), jnp.float32), "be2": jnp.zeros((1, 64), jnp.float32),
        "w3": w3, "b3": b3,
    }


def _reference(x, p):
    """Pure-JAX reference (keeps the fc biases the kernel drops)."""
    h = x @ p["w1"] + p["b1"]
    m = h.mean(0, keepdims=True)
    v = ((h - m) ** 2).mean(0, keepdims=True)
    h = jnp.maximum((h - m) * jax.lax.rsqrt(v + BN_EPS) * p["g1"] + p["be1"], 0.0)
    h = h @ p["w2"] + p["b2"]
    m = h.mean(0, keepdims=True)
    v = ((h - m) ** 2).mean(0, keepdims=True)
    h = jnp.maximum((h - m) * jax.lax.rsqrt(v + BN_EPS) * p["g2"] + p["be2"], 0.0)
    return h @ p["w3"] + p["b3"]


if __name__ == "__main__":
    client_num = 10   # input dim 10, output dim 11
    batch = 8

    key = jax.random.PRNGKey(0)
    kx, kp = jax.random.split(key)
    x = jax.random.normal(kx, (batch, client_num), jnp.float32)
    params = init_params(kp, client_num)
    packed, out_dim = pack_params(params)

    out = fcn_forward(x, packed, out_dim)
    out = jax.block_until_ready(out)

    ref = _reference(x, params)
    assert out.shape == (batch, client_num + 1)
    assert jnp.allclose(out, ref, atol=1e-3, rtol=1e-3), "mismatch vs reference"

    print("KERNEL_OK")
</pallas_src>

<mosaic_0001>
module attributes {stable_mosaic.version = 11 : i64} {
  func.func @_fcn_kernel(%arg0: memref<8x10xf32, #tpu.memory_space<vmem>>, %arg1: memref<10x256xf32, #tpu.memory_space<vmem>>, %arg2: memref<2x256xf32, #tpu.memory_space<vmem>>, %arg3: memref<256x64xf32, #tpu.memory_space<vmem>>, %arg4: memref<2x64xf32, #tpu.memory_space<vmem>>, %arg5: memref<64x128xf32, #tpu.memory_space<vmem>>, %arg6: memref<1x128xf32, #tpu.memory_space<vmem>>, %arg7: memref<8x128xf32, #tpu.memory_space<vmem>>) attributes {dimension_semantics = [], scalar_prefetch = 0 : i64, scratch_operands = 0 : i64, tpu.core_type = #tpu.core_type<tc>} {
    %c0 = arith.constant 0 : index
    %c0_0 = arith.constant 0 : index
    %0 = vector.load %arg0[%c0, %c0_0] : memref<8x10xf32, #tpu.memory_space<vmem>>, vector<8x10xf32>
    %cst = arith.constant 1.000000e+00 : f32
    %1 = vector.broadcast %cst : f32 to vector<1x8xf32>
    %c0_1 = arith.constant 0 : index
    %c0_2 = arith.constant 0 : index
    %2 = vector.load %arg1[%c0_1, %c0_2] : memref<10x256xf32, #tpu.memory_space<vmem>>, vector<10x256xf32>
    %cst_3 = arith.constant dense<0.000000e+00> : vector<8x256xf32>
    %3 = tpu.matmul %0, %2, %cst_3 {dimension_numbers = #tpu.dot_dimension_numbers<[1], [0], [0], [1], [0, 0, 1, 1], [], []>} : vector<8x10xf32>, vector<10x256xf32>, vector<8x256xf32> -> vector<8x256xf32>
    %c0_4 = arith.constant 0 : index
    %c0_5 = arith.constant 0 : index
    %4 = vector.load %arg2[%c0_4, %c0_5] : memref<2x256xf32, #tpu.memory_space<vmem>>, vector<2x256xf32>
    %cst_6 = arith.constant dense<0.000000e+00> : vector<1x256xf32>
    %5 = tpu.matmul %1, %3, %cst_6 {dimension_numbers = #tpu.dot_dimension_numbers<[1], [0], [0], [1], [0, 0, 1, 1], [], []>} : vector<1x8xf32>, vector<8x256xf32>, vector<1x256xf32> -> vector<1x256xf32>
    %6 = arith.mulf %3, %3 : vector<8x256xf32>
    %cst_7 = arith.constant dense<0.000000e+00> : vector<1x256xf32>
    %7 = tpu.matmul %1, %6, %cst_7 {dimension_numbers = #tpu.dot_dimension_numbers<[1], [0], [0], [1], [0, 0, 1, 1], [], []>} : vector<1x8xf32>, vector<8x256xf32>, vector<1x256xf32> -> vector<1x256xf32>
    %cst_8 = arith.constant 1.250000e-01 : f32
    %8 = vector.broadcast %cst_8 : f32 to vector<1x256xf32>
    %9 = arith.mulf %5, %8 : vector<1x256xf32>
    %cst_9 = arith.constant 1.250000e-01 : f32
    %10 = vector.broadcast %cst_9 : f32 to vector<1x256xf32>
    %11 = arith.mulf %7, %10 : vector<1x256xf32>
    %12 = arith.mulf %9, %9 : vector<1x256xf32>
    %13 = arith.subf %11, %12 : vector<1x256xf32>
    %cst_10 = arith.constant 0.000000e+00 : f32
    %14 = vector.broadcast %cst_10 : f32 to vector<1x256xf32>
    %15 = arith.maximumf %13, %14 : vector<1x256xf32>
    %16 = vector.extract_strided_slice %4 {offsets = [0, 0], sizes = [1, 256], strides = [1, 1]} : vector<2x256xf32> to vector<1x256xf32>
    %17 = vector.extract_strided_slice %4 {offsets = [1, 0], sizes = [1, 256], strides = [1, 1]} : vector<2x256xf32> to vector<1x256xf32>
    %18 = vector.broadcast %9 : vector<1x256xf32> to vector<8x256xf32>
    %19 = arith.subf %3, %18 : vector<8x256xf32>
    %cst_11 = arith.constant 9.99999974E-6 : f32
    %20 = vector.broadcast %cst_11 : f32 to vector<1x256xf32>
    %21 = arith.addf %15, %20 : vector<1x256xf32>
    %22 = math.rsqrt %21 : vector<1x256xf32>
    %23 = vector.broadcast %22 : vector<1x256xf32> to vector<8x256xf32>
    %24 = arith.mulf %19, %23 : vector<8x256xf32>
    %25 = vector.broadcast %16 : vector<1x256xf32> to vector<8x256xf32>
    %26 = arith.mulf %24, %25 : vector<8x256xf32>
    %27 = vector.broadcast %17 : vector<1x256xf32> to vector<8x256xf32>
    %28 = arith.addf %26, %27 : vector<8x256xf32>
    %cst_12 = arith.constant 0.000000e+00 : f32
    %29 = vector.broadcast %cst_12 : f32 to vector<8x256xf32>
    %30 = arith.maximumf %28, %29 : vector<8x256xf32>
    %c0_13 = arith.constant 0 : index
    %c0_14 = arith.constant 0 : index
    %31 = vector.load %arg3[%c0_13, %c0_14] : memref<256x64xf32, #tpu.memory_space<vmem>>, vector<256x64xf32>
    %cst_15 = arith.constant dense<0.000000e+00> : vector<8x64xf32>
    %32 = tpu.matmul %30, %31, %cst_15 {dimension_numbers = #tpu.dot_dimension_numbers<[1], [0], [0], [1], [0, 0, 1, 1], [], []>} : vector<8x256xf32>, vector<256x64xf32>, vector<8x64xf32> -> vector<8x64xf32>
    %c0_16 = arith.constant 0 : index
    %c0_17 = arith.constant 0 : index
    %33 = vector.load %arg4[%c0_16, %c0_17] : memref<2x64xf32, #tpu.memory_space<vmem>>, vector<2x64xf32>
    %cst_18 = arith.constant dense<0.000000e+00> : vector<1x64xf32>
    %34 = tpu.matmul %1, %32, %cst_18 {dimension_numbers = #tpu.dot_dimension_numbers<[1], [0], [0], [1], [0, 0, 1, 1], [], []>} : vector<1x8xf32>, vector<8x64xf32>, vector<1x64xf32> -> vector<1x64xf32>
    %35 = arith.mulf %32, %32 : vector<8x64xf32>
    %cst_19 = arith.constant dense<0.000000e+00> : vector<1x64xf32>
    %36 = tpu.matmul %1, %35, %cst_19 {dimension_numbers = #tpu.dot_dimension_numbers<[1], [0], [0], [1], [0, 0, 1, 1], [], []>} : vector<1x8xf32>, vector<8x64xf32>, vector<1x64xf32> -> vector<1x64xf32>
    %cst_20 = arith.constant 1.250000e-01 : f32
    %37 = vector.broadcast %cst_20 : f32 to vector<1x64xf32>
    %38 = arith.mulf %34, %37 : vector<1x64xf32>
    %cst_21 = arith.constant 1.250000e-01 : f32
    %39 = vector.broadcast %cst_21 : f32 to vector<1x64xf32>
    %40 = arith.mulf %36, %39 : vector<1x64xf32>
    %41 = arith.mulf %38, %38 : vector<1x64xf32>
    %42 = arith.subf %40, %41 : vector<1x64xf32>
    %cst_22 = arith.constant 0.000000e+00 : f32
    %43 = vector.broadcast %cst_22 : f32 to vector<1x64xf32>
    %44 = arith.maximumf %42, %43 : vector<1x64xf32>
    %45 = vector.extract_strided_slice %33 {offsets = [0, 0], sizes = [1, 64], strides = [1, 1]} : vector<2x64xf32> to vector<1x64xf32>
    %46 = vector.extract_strided_slice %33 {offsets = [1, 0], sizes = [1, 64], strides = [1, 1]} : vector<2x64xf32> to vector<1x64xf32>
    %47 = vector.broadcast %38 : vector<1x64xf32> to vector<8x64xf32>
    %48 = arith.subf %32, %47 : vector<8x64xf32>
    %cst_23 = arith.constant 9.99999974E-6 : f32
    %49 = vector.broadcast %cst_23 : f32 to vector<1x64xf32>
    %50 = arith.addf %44, %49 : vector<1x64xf32>
    %51 = math.rsqrt %50 : vector<1x64xf32>
    %52 = vector.broadcast %51 : vector<1x64xf32> to vector<8x64xf32>
    %53 = arith.mulf %48, %52 : vector<8x64xf32>
    %54 = vector.broadcast %45 : vector<1x64xf32> to vector<8x64xf32>
    %55 = arith.mulf %53, %54 : vector<8x64xf32>
    %56 = vector.broadcast %46 : vector<1x64xf32> to vector<8x64xf32>
    %57 = arith.addf %55, %56 : vector<8x64xf32>
    %cst_24 = arith.constant 0.000000e+00 : f32
    %58 = vector.broadcast %cst_24 : f32 to vector<8x64xf32>
    %59 = arith.maximumf %57, %58 : vector<8x64xf32>
    %c0_25 = arith.constant 0 : index
    %c0_26 = arith.constant 0 : index
    %60 = vector.load %arg5[%c0_25, %c0_26] : memref<64x128xf32, #tpu.memory_space<vmem>>, vector<64x128xf32>
    %cst_27 = arith.constant dense<0.000000e+00> : vector<8x128xf32>
    %61 = tpu.matmul %59, %60, %cst_27 {dimension_numbers = #tpu.dot_dimension_numbers<[1], [0], [0], [1], [0, 0, 1, 1], [], []>} : vector<8x64xf32>, vector<64x128xf32>, vector<8x128xf32> -> vector<8x128xf32>
    %c0_28 = arith.constant 0 : index
    %c0_29 = arith.constant 0 : index
    %62 = vector.load %arg6[%c0_28, %c0_29] : memref<1x128xf32, #tpu.memory_space<vmem>>, vector<1x128xf32>
    %63 = vector.broadcast %62 : vector<1x128xf32> to vector<8x128xf32>
    %64 = arith.addf %61, %63 : vector<8x128xf32>
    %c0_30 = arith.constant 0 : index
    %c0_31 = arith.constant 0 : index
    %65 = vector.load %arg7[%c0_30, %c0_31] : memref<8x128xf32, #tpu.memory_space<vmem>>, vector<8x128xf32>
    tpu.vector_store %arg7[%c0_30, %c0_31], %64 {strides = array<i32>} : memref<8x128xf32, #tpu.memory_space<vmem>>, vector<8x128xf32>,
    return
  }
}

</mosaic_0001>

<bundles_post_ra>
// kernel: fcn_forward.1
= control target key start
LH: loop header
LB: loop body
LE: loop exit
PB: predicated region body
PF: predicated region fallthrough
CT: control target
= control target key end

     0   :  { %vm36_vm0 = vcmask 1041408   ;;  %vm888_vm1 = vmmov 1   ;;  %v889_v6 = vmov 0.0   ;;  %s1136_s0 = inlined_call_operand.vmem [shape: f32[8,10], index: 0, kind: input, shape index: {}]   ;;  %s1137_s1 = inlined_call_operand.vmem [shape: f32[10,256], index: 1, kind: input, shape index: {}]   ;;  %s1138_s2 = inlined_call_operand.vmem [shape: f32[2,256], index: 2, kind: input, shape index: {}]   ;;  %s1139_s3 = inlined_call_operand.vmem [shape: f32[256,64], index: 3, kind: input, shape index: {}]   ;;  %s1140_s4 = inlined_call_operand.vmem [shape: f32[2,64], index: 4, kind: input, shape index: {}]   ;;  %s1141_s5 = inlined_call_operand.vmem [shape: f32[64,128], index: 5, kind: input, shape index: {}]   ;;  %s1142_s6 = inlined_call_operand.vmem [shape: f32[1,128], index: 6, kind: input, shape index: {}]   ;;  %s1143_s7 = inlined_call_operand.hbm [shape: f32[8,128], index: 7, kind: output, shape index: {}]  }
   0x1   :  { %v29_v0 = vld [vmem:[%s1137_s1 + $0x8] sm:$0xff]  ;;  %v31_v1 = vld [vmem:[%s1137_s1 + $0x18] sm:$0x3]  ;;  %v28_v2 = vld [vmem:[%s1137_s1] sm:$0xff]  ;;  %107 = vmatprep.mubr.f32.mxu0 %v889_v6  ;;  %183 = vmatprep.mubr.f32.mxu1 %v889_v6 }
   0x2   :  { %v802_v3 = vpack.c.bf16 %v31_v1, %v29_v0  ;;  %vm803_vm2 = vmpackc.low %vm36_vm0, %vm888_vm1  ;;  %v30_v4 = vld [vmem:[%s1137_s1 + $0x10] sm:$0x3] }
   0x3   :  { %v805_v5 = vpack.c.bf16 %v30_v4, %v28_v2 }
   0x4   :  { %12 = vsyncpa [#allocation3], 0  ;;  %804 = vmatprep.subr.msk.bf16.mxu0 %vm803_vm2, %v802_v3  ;;  %v27_v7 = vld [vmem:[%s1136_s0] sm:$0xff]  ;;  %vm32_vm3 = vcmask 80896   ;;  %vm115_vm4 = vcmask 64512   ;;  %v890_v12 = vmov 1.0   ;;  %v273_v61 = vlaneseq }
   0x5   :  { %807 = vmatpush1.bf16.msk.msra.mxu0 %vm803_vm2, %v805_v5  ;;  %v356_v13 = vld [vmem:[%s1139_s3 + $0x80] sm:$0xff]  ;;  %v357_v14 = vld [vmem:[%s1139_s3 + $0x88] sm:$0xff]  ;;  %v358_v19 = vld [vmem:[%s1139_s3 + $0x90] sm:$0xff]  ;;  %vm891_vm5 = vmmov 0   ;;  %vm627_vm6 = vcmask 523264   ;;  %s893_s17 = smov [#allocation2]  }
   0x6   :  { %v808_v15 = vpack.c.bf16 %v357_v14, %v356_v13  ;;  %v340_v16 = vld [vmem:[%s1139_s3] sm:$0xff]  ;;  %v341_v17 = vld [vmem:[%s1139_s3 + $0x8] sm:$0xff]  ;;  %v359_v20 = vld [vmem:[%s1139_s3 + $0x98] sm:$0xff]  ;;  %v274_v62 = vshrl.u32 %v273_v61, 7 }
   0x7   :  { %v810_v18 = vpack.c.bf16 %v341_v17, %v340_v16  ;;  %v812_v21 = vpack.c.bf16 %v359_v20, %v358_v19  ;;  %v342_v22 = vld [vmem:[%s1139_s3 + $0x10] sm:$0xff]  ;;  %v343_v23 = vld [vmem:[%s1139_s3 + $0x18] sm:$0xff]  ;;  %v360_v25 = vld [vmem:[%s1139_s3 + $0xa0] sm:$0xff] }
   0x8   :  { %718 = vmatmul.mubr.msk.f32.vlgmr.msra.gmra.mrb[0].mxu0 %vm32_vm3, %v27_v7  ;;  %809 = vmatprep.subr.bf16.mxu0 %v808_v15  ;;  %v814_v24 = vpack.c.bf16 %v343_v23, %v342_v22  ;;  %v361_v26 = vld [vmem:[%s1139_s3 + $0xa8] sm:$0xff]  ;;  %v344_v28 = vld [vmem:[%s1139_s3 + $0x20] sm:$0xff]  ;;  %v362_v31 = vld [vmem:[%s1139_s3 + $0xb0] sm:$0xff]  ;;  %v1063_v63 = vsub.s32 0, %v274_v62 }
   0x9   :  { %811 = vmatpush3.bf16.msra.mxu0 %v810_v18  ;;  %v816_v27 = vpack.c.bf16 %v361_v26, %v360_v25  ;;  %v345_v29 = vld [vmem:[%s1139_s3 + $0x28] sm:$0xff]  ;;  %v363_v32 = vld [vmem:[%s1139_s3 + $0xb8] sm:$0xff]  ;;  %v346_v34 = vld [vmem:[%s1139_s3 + $0x30] sm:$0xff]  ;;  %v304_v25 = vsub.s32 2, %v274_v62  ;;  %v324_v26 = vsub.s32 3, %v274_v62 }
   0xa   :  { %813 = vmatprep.subr.bf16.mxu0 %v812_v21  ;;  %v818_v30 = vpack.c.bf16 %v345_v29, %v344_v28  ;;  %v820_v33 = vpack.c.bf16 %v363_v32, %v362_v31  ;;  %v347_v35 = vld [vmem:[%s1139_s3 + $0x38] sm:$0xff]  ;;  %v364_v36 = vld [vmem:[%s1139_s3 + $0xc0] sm:$0xff]  ;;  %v365_v38 = vld [vmem:[%s1139_s3 + $0xc8] sm:$0xff] }
   0xb   :  { %v822_v37 = vpack.c.bf16 %v347_v35, %v346_v34  ;;  %v348_v39 = vld [vmem:[%s1139_s3 + $0x40] sm:$0xff]  ;;  %v349_v40 = vld [vmem:[%s1139_s3 + $0x48] sm:$0xff]  ;;  %v824_v41 = vpack.c.bf16 %v365_v38, %v364_v36  ;;  %v366_v42 = vld [vmem:[%s1139_s3 + $0xd0] sm:$0xff] }
   0xc   :  { %v367_v43 = vld [vmem:[%s1139_s3 + $0xd8] sm:$0xff]  ;;  %v826_v44 = vpack.c.bf16 %v349_v40, %v348_v39  ;;  %v350_v46 = vld [vmem:[%s1139_s3 + $0x50] sm:$0xff]  ;;  %v368_v48 = vld [vmem:[%s1139_s3 + $0xe0] sm:$0xff] }
   0xd   :  { %815 = vmatpush3.bf16.msra.mxu0 %v814_v24  ;;  %v828_v45 = vpack.c.bf16 %v367_v43, %v366_v42  ;;  %v351_v47 = vld [vmem:[%s1139_s3 + $0x58] sm:$0xff]  ;;  %v369_v49 = vld [vmem:[%s1139_s3 + $0xe8] sm:$0xff]  ;;  %v352_v52 = vld [vmem:[%s1139_s3 + $0x60] sm:$0xff] }
   0xe   :  { %817 = vmatprep.subr.bf16.mxu0 %v816_v27  ;;  %v830_v50 = vpack.c.bf16 %v351_v47, %v350_v46  ;;  %v832_v51 = vpack.c.bf16 %v369_v49, %v368_v48  ;;  %v353_v53 = vld [vmem:[%s1139_s3 + $0x68] sm:$0xff]  ;;  %v370_v54 = vld [vmem:[%s1139_s3 + $0xf0] sm:$0xff]  ;;  %v371_v55 = vld [vmem:[%s1139_s3 + $0xf8] sm:$0xff] }
   0xf   :  { %v834_v56 = vpack.c.bf16 %v353_v53, %v352_v52  ;;  %v836_v57 = vpack.c.bf16 %v371_v55, %v370_v54  ;;  %v354_v58 = vld [vmem:[%s1139_s3 + $0x70] sm:$0xff]  ;;  %v355_v59 = vld [vmem:[%s1139_s3 + $0x78] sm:$0xff]  ;;  %v114_v24 = vld [vmem:[%s1138_s2] sm:$0xf]  ;;  %v892_v53 = vmov 0.0|0.0  }
  0x10   :  { %v838_v60 = vpack.c.bf16 %v355_v59, %v354_v58  ;;  %v301_v27 = vrot.slane %v114_v24, %v1063_v63  ;;  %v614_v54 = vld [vmem:[%s1141_s5 + $0x10] sm:$0xff]  ;;  %v616_v55 = vld [vmem:[%s1141_s5 + $0x20] sm:$0xff]  ;;  %v619_v59 = vld [vmem:[%s1141_s5 + $0x38] sm:$0xff] }
  0x11   :  { %819 = vmatpush3.bf16.msra.mxu0 %v818_v30  ;;  %v325_v30 = vrot.slane %v114_v24, %v324_v26 }
  0x12   :  { %821 = vmatprep.subr.bf16.mxu0 %v820_v33  ;;  %v311_v33 = vrot.slane %v301_v27, %v1063_v63 }
  0x15   :  { %823 = vmatpush3.bf16.msra.mxu0 %v822_v37 }
  0x16   :  { %825 = vmatprep.subr.bf16.mxu0 %v824_v41 }
  0x19   :  { %827 = vmatpush3.bf16.msra.mxu0 %v826_v44 }
  0x1a   :  { %829 = vmatprep.subr.bf16.mxu0 %v828_v45 }
  0x1d   :  { %831 = vmatpush3.bf16.msra.mxu0 %v830_v50  ;;  %v612_v50 = vld [vmem:[%s1141_s5] sm:$0xff] }
  0x1e   :  { %833 = vmatprep.subr.bf16.mxu0 %v832_v51  ;;  %v613_v51 = vld [vmem:[%s1141_s5 + $0x8] sm:$0xff] }
  0x1f   :  { %v841_v52 = vpack.c.bf16 %v613_v51, %v612_v50 }
  0x21   :  { %835 = vmatpush3.bf16.msra.mxu0 %v834_v56  ;;  %v617_v56 = vld [vmem:[%s1141_s5 + $0x28] sm:$0xff] }
  0x22   :  { %837 = vmatprep.subr.bf16.mxu0 %v836_v57  ;;  %v618_v57 = vld [vmem:[%s1141_s5 + $0x30] sm:$0xff]  ;;  %v847_v58 = vpack.c.bf16 %v617_v56, %v616_v55 }
  0x25   :  { %839 = vmatpush3.bf16.msra.mxu0 %v838_v60  ;;  %v850_v60 = vpack.c.bf16 %v619_v59, %v618_v57 }
  0xdb   :  { %v951_v8 = vpop.f32.mrb[0].mxu0 }
  0xdc   :  { %v953_v9 = vpop.f32.mrb[1].mxu0  ;;  %v190_v11 = vmul.f32 %v951_v8, %v951_v8 }
  0xdd   :  { %v191_v10 = vmul.f32 %v953_v9, %v953_v9  ;;  %119 = vmatprep.subr.mxu1 %v953_v9 }
  0xde   :  { %120 = vmatpush1.msra.mxu1 %v951_v8 }
  0xdf   :  { %719 = vmatmul.mubr.msk.f32.vlgmr.msra.gmra.mrb[0].mxu1 %vm115_vm4, %v890_v12  ;;  %192 = vmatprep.subr.mxu1 %v191_v10 }
  0xe0   :  { %193 = vmatpush1.msra.mxu1 %v190_v11  ;;  %256 = vmatprep.mubr.f32.mxu1 %v889_v6 }
  0xe1   :  { %773 = vmatprep.subr.mxu1 %v889_v6 }
  0xe3   :  { %720 = vmatmul.mubr.msk.f32.vlgmr.msra.gmra.mrb[2].mxu1 %vm115_vm4, %v890_v12 }
  0xe4   :  { %775 = vmatprep.mubr.msk.f32.mxu1 %vm891_vm5, %v889_v6 }
 0x1b2   :  { %v185_v0 = vpop.f32.mrb[0].mxu1 }
 0x1b3   :  { %v263_v1 = vmul.f32 0.125, %v185_v0  ;;  %v187_v2 = vpop.f32.mrb[1].mxu1 }
 0x1b4   :  { %v264_v3 = vmul.f32 0.125, %v187_v2 }
 0x1b5   :  { %v276_v4 = vrot.slane %v263_v1, %v1063_v63  ;;  %v267_v10 = vmul.f32 %v263_v1, %v263_v1 }
 0x1b6   :  { %v280_v5 = vrot.slane %v264_v3, %v1063_v63  ;;  %v258_v7 = vpop.f32.mrb[2].mxu1  ;;  %v268_v15 = vmul.f32 %v264_v3, %v264_v3 }
 0x1b7   :  { %v281_v11 = vsub.f32 %v951_v8, %v276_v4  ;;  %v265_v13 = vmul.f32 0.125, %v258_v7  ;;  %v260_v14 = vpop.f32.mrb[3].mxu1  ;;  %v1072_v8 = vsub.s32 1, %v274_v62 }
 0x1b8   :  { %v282_v16 = vsub.f32 %v953_v9, %v280_v5  ;;  %v266_v17 = vmul.f32 0.125, %v260_v14  ;;  %v305_v9 = vrot.slane %v114_v24, %v304_v25 }
 0x1b9   :  { %v269_v18 = vsub.f32 %v265_v13, %v267_v10  ;;  %v321_v28 = vrot.slane %v114_v24, %v1072_v8  ;;  %v335_v39 = vrot.slane %v325_v30, %v1072_v8  ;;  %v442_v13 = vld [vmem:[%s1140_s4] sm:$0x3]  ;;  %s708_s4 = sshll.u32 %s893_s17, 4  ;;  %s709_s4 = int_to_ptr.vmem [resolvable:$true] %s708_s4 }
 0x1ba   :  { %v270_v19 = vsub.f32 %v266_v17, %v268_v15  ;;  %v315_v35 = vrot.slane %v305_v9, %v1063_v63  ;;  %v604_v17 = vrot.slane %v442_v13, %v1063_v63  ;;  %s864_s18 = scalar_lea.vmem %s709_s4, 128  ;;  %p869_p1 = scmp.lt.s32.totalorder %s709_s4, %s709_s4 }
 0x1bb   :  { %v271_v20 = vmax.f32 %v269_v18, 0.0  ;;  %v331_v37 = vrot.slane %v321_v28, %v1072_v8  ;;  %p865_p0 = scmp.ne.s32.totalorder %s709_s4, %s864_s18  ;;  %p870_p2 = scmp.lt.s32.totalorder %s864_s18, %s864_s18 }
 0x1bc   :  { %v272_v21 = vmax.f32 %v270_v19, 0.0  ;;  %v609_v19 = vrot.slane %v442_v13, %v1072_v8 }
 0x1bd   :  { %v283_v22 = vadd.f32 1e-05, %v271_v20  ;;  %p871_p3 = por %p870_p2, %p869_p1 }
 0x1be   :  { %v284_v23 = vadd.f32 1e-05, %v272_v21 }
 0x1bf   :  { %858 = vrsqrt.f32 %v283_v22  ;;  %p872_p4 = pnand %p871_p3, %p865_p0 }
 0x1c0   :  { %860 = vrsqrt.f32 %v284_v23  ;;  %v723_v23 = vld [vmem:[%s1142_s6] ss:$0 sm:$0xff] }
 0x1c9   :  { %v859_v29 = vpop.eup %858 }
 0x1ca   :  { %v861_v31 = vpop.eup %860  ;;  %v290_v32 = vrot.slane %v859_v29, %v1063_v63 }
 0x1cb   :  { %v294_v34 = vrot.slane %v861_v31, %v1063_v63 }
 0x1cc   :  { %v295_v36 = vmul.f32 %v290_v32, %v281_v11 }
 0x1cd   :  { %v296_v38 = vmul.f32 %v294_v34, %v282_v16 }
 0x1ce   :  { %v316_v40 = vmul.f32 %v311_v33, %v295_v36 }
 0x1cf   :  { %v317_v41 = vmul.f32 %v315_v35, %v296_v38 }
 0x1d0   :  { %v336_v42 = vadd.f32 %v331_v37, %v316_v40 }
 0x1d1   :  { %v337_v43 = vadd.f32 %v335_v39, %v317_v41 }
 0x1d2   :  { %v338_v45 = vmax.f32 %v336_v42, 0.0 }
 0x1d3   :  { %v339_v44 = vmax.f32 %v337_v43, 0.0 }
 0x1d5   :  { %436 = vmatprep.mubr.f32.mxu0 %v339_v44 }
 0x1d6   :  { %437 = vmatmul.mubr.f32.vlgmr.msra.gmra.mrb[2].mxu0 %v338_v45 }
 0x2a9   :  { %v757_v46 = vpop.f32.mrb[2].mxu0 }
 0x2aa   :  { %v758_v47 = vpop.f32.mrb[3].mxu0 }
 0x2ab   :  { %v759_v48 = vadd.f32 %v758_v47, %v757_v46 }
 0x2ad   :  { %v513_v49 = vmul.f32 %v759_v48, %v759_v48  ;;  %774 = vmatpush3.msra.mxu1 %v759_v48 }
 0x2ae   :  { %776 = vmatmul.mubr.msk.f32.vlgmr.msra.gmra.mrb[4].mxu1 %vm115_vm4, %v890_v12  ;;  %778 = vmatprep.subr.mxu1 %v889_v6 }
 0x2af   :  { %779 = vmatpush3.msra.mxu1 %v513_v49  ;;  %780 = vmatprep.mubr.msk.f32.mxu1 %vm891_vm5, %v889_v6 }
 0x2b0   :  { %840 = vmatprep.subr.bf16.mxu1 %v892_v53 }
 0x2b2   :  { %781 = vmatmul.mubr.msk.f32.vlgmr.msra.gmra.mrb[6].mxu1 %vm115_vm4, %v890_v12 }
 0x2b3   :  { %799 = vmatprep.mubr.msk.f32.mxu1 %vm891_vm5, %v889_v6  ;;  %842 = vmatpush3.bf16.msra.mxu1 %v841_v52  ;;  %v615_v6 = vld [vmem:[%s1141_s5 + $0x18] sm:$0xff] }
 0x2b4   :  { %843 = vmatprep.subr.bf16.mxu1 %v892_v53  ;;  %v844_v12 = vpack.c.bf16 %v615_v6, %v614_v54 }
 0x2b7   :  { %845 = vmatpush3.bf16.msra.mxu1 %v844_v12 }
 0x2b8   :  { %846 = vmatprep.subr.bf16.mxu1 %v892_v53 }
 0x2bb   :  { %848 = vmatpush3.bf16.msra.mxu1 %v847_v58 }
 0x2bc   :  { %849 = vmatprep.subr.bf16.mxu1 %v892_v53 }
 0x2bf   :  { %851 = vmatpush3.bf16.msra.mxu1 %v850_v60 }
 0x381   :  { %v509_v61 = vpop.f32.mrb[4].mxu1 }
 0x382   :  { %v584_v62 = vmul.f32 0.125, %v509_v61  ;;  %v777_v0 = vpop.f32.mrb[5].mxu1 }
 0x384   :  { %v586_v2 = vmul.f32 %v584_v62, %v584_v62  ;;  %v592_v11 = vrot.slane %v584_v62, %v1063_v63 }
 0x385   :  { %v580_v1 = vpop.f32.mrb[6].mxu1 }
 0x386   :  { %v585_v3 = vmul.f32 0.125, %v580_v1  ;;  %v782_v4 = vpop.f32.mrb[7].mxu1  ;;  %v593_v15 = vsub.f32 %v759_v48, %v592_v11 }
 0x388   :  { %v587_v5 = vsub.f32 %v585_v3, %v586_v2 }
 0x38a   :  { %v588_v7 = vmax.f32 %v587_v5, 0.0 }
 0x38c   :  { %v594_v10 = vadd.f32 1e-05, %v588_v7 }
 0x38e   :  { %862 = vrsqrt.f32 %v594_v10 }
 0x398   :  { %v863_v14 = vpop.eup %862 }
 0x399   :  { %v599_v16 = vrot.slane %v863_v14, %v1063_v63 }
 0x39b   :  { %v600_v18 = vmul.f32 %v599_v16, %v593_v15 }
 0x39d   :  { %v605_v20 = vmul.f32 %v604_v17, %v600_v18 }
 0x39f   :  { %v610_v21 = vadd.f32 %v609_v19, %v605_v20 }
 0x3a1   :  { %v611_v22 = vmax.f32 %v610_v21, 0.0 }
 0x3a3   :  { %800 = vmatmul.mubr.msk.f32.vlgmr.msra.gmra.mrb[8].mxu1 %vm627_vm6, %v611_v22 }
 0x476   :  { %v697_v24 = vpop.f32.mrb[8].mxu1 }
 0x477   :  { %v698_v25 = vadd.f32 %v723_v23, %v697_v24  ;;  %v801_v26 = vpop.f32.mrb[9].mxu1 }
 0x479   :  { %701 = vst [vmem:[#allocation2] sm:$0xff] %v698_v25 }
 0x47a   :  { %875 = shalt.err (!%p872_p4)
}
 0x47b   :  { %s876_s21 = scalar_lea.hbm %s1143_s7, 128 }
 0x47c   :  { %p877_p5 = scmp.ne.s32.totalorder %s1143_s7, %s876_s21  ;;  %p880_p6 = scmp.lt.u32.totalorder %s876_s21, %s1143_s7 }
 0x47e   :  { %p882_p7 = pnand %p880_p6, %p877_p5 }
 0x480   :  { %885 = shalt.err (!%p882_p7)
}
 0x481   :  { %711 = dma.vmem_to_hbm [thread:$0]  %s709_s4, 128, %s1143_s7, [#allocation3]  }
 0x482   :  { %886 = dma.done.wait [#allocation3], 128  }
 0x483   :  { %887 = vsyncadd [#allocation3], 4294967168 }
 0x484   :  { %715 = vsyncpa [#allocation3], 1 }

</bundles_post_ra>
